<compile_context>
chip_gen: v7x
topology: tpu7x:2x2x1
jax: 0.10.0
libtpu: 0.0.40
codegen_flags: <defaults>
</compile_context>

<pallas_src>
import math

import jax
import jax.numpy as jnp
from jax import lax
from jax.experimental import pallas as pl
from jax.experimental.pallas import tpu as pltpu


def _make_kernel(num_heads, head_dim, block_q, block_k, use_mask):
    H, Hd = num_heads, head_dim
    rows = H * block_q                       # head-batched rows (head-major order)
    inv_scale = 1.0 / math.sqrt(float(Hd))

    def kernel(*refs):
        if use_mask:
            (xq_ref, xk_ref, mask_ref,
             wq_ref, bq_ref, wkv_ref, bkv_ref, wo_ref, bo_ref,
             o_ref, q_scr, m_scr, l_scr, acc_scr) = refs
        else:
            (xq_ref, xk_ref,
             wq_ref, bq_ref, wkv_ref, bkv_ref, wo_ref, bo_ref,
             o_ref, q_scr, m_scr, l_scr, acc_scr) = refs
            mask_ref = None

        ki = pl.program_id(2)

        # ---- first K/V tile for this (batch, q-tile): project Q once, reset stats
        @pl.when(ki == 0)
        def _():
            xq = xq_ref[0]                                               # (block_q, E)
            q = jnp.dot(xq, wq_ref[...],
                        preferred_element_type=jnp.float32) + bq_ref[...]
            q = q * inv_scale                                            # pre-scale Q
            # Head-batched layout: row h*block_q + t holds head h of query t.
            q2 = jnp.concatenate(
                [q[:, h * Hd:(h + 1) * Hd] for h in range(H)], axis=0)   # (rows, Hd)
            q_scr[...] = q2.astype(q_scr.dtype)
            m_scr[...] = jnp.full(m_scr.shape, -jnp.inf, jnp.float32)
            l_scr[...] = jnp.zeros(l_scr.shape, jnp.float32)
            acc_scr[...] = jnp.zeros(acc_scr.shape, jnp.float32)

        # ---- fused K/V projection for this key tile: one (E, 2*Hd) matmul
        xk = xk_ref[0]                                                   # (block_k, E)
        kv = jnp.dot(xk, wkv_ref[...],
                     preferred_element_type=jnp.float32) + bkv_ref[...]
        k = kv[:, :Hd].astype(xk.dtype)                                  # (block_k, Hd)
        v = kv[:, Hd:].astype(xk.dtype)                                  # (block_k, Hd)

        # ---- scores for all heads at once; contract last dims (no explicit k.T)
        s = lax.dot_general(q_scr[...], k, (((1,), (1,)), ((), ())),
                            preferred_element_type=jnp.float32)          # (rows, block_k)

        if use_mask:
            bias = jnp.where(mask_ref[0] == 0, -1e30, 0.0).astype(jnp.float32)
            # broadcast over heads: rows are head-major, so stack H copies.
            s = s + jnp.concatenate([bias] * H, axis=0)

        # ---- online softmax update (one pass for all heads)
        m_prev = m_scr[...]
        m_new = jnp.maximum(m_prev, jnp.max(s, axis=-1, keepdims=True))
        alpha = jnp.exp(m_prev - m_new)
        p = jnp.exp(s - m_new)
        l_scr[...] = alpha * l_scr[...] + jnp.sum(p, axis=-1, keepdims=True)
        acc_scr[...] = alpha * acc_scr[...] + jnp.dot(
            p.astype(v.dtype), v, preferred_element_type=jnp.float32)    # (rows, Hd)
        m_scr[...] = m_new

        # ---- last K/V tile: normalize, merge heads, output projection, store
        @pl.when(ki == pl.num_programs(2) - 1)
        def _():
            ctx2 = acc_scr[...] / l_scr[...]                             # (rows, Hd)
            # back to the concatenated-heads (block_q, E) layout of the module
            ctx = jnp.concatenate(
                [ctx2[h * block_q:(h + 1) * block_q, :] for h in range(H)],
                axis=1).astype(wo_ref.dtype)                             # (block_q, E)
            out = jnp.dot(ctx, wo_ref[...],
                          preferred_element_type=jnp.float32) + bo_ref[...]
            o_ref[0] = out.astype(o_ref.dtype)

    return kernel


def _choose_block(total, preferred, lane):
    """Largest tile <= preferred that divides `total` and obeys TPU tiling rules
    (a trailing BlockSpec dim must be a multiple of 128 -- of 8 for the
    second-minor dim -- or cover the whole axis)."""
    if preferred >= total:
        return total
    quantum = 128 if lane else 8
    b = (min(preferred, total) // quantum) * quantum
    while b >= quantum:
        if total % b == 0:
            return b
        b -= quantum
    return total


def multiquery_attention(hidden_states, params, num_heads, attention_mask=None,
                         *, block_q=256, block_k=256, compute_dtype=None):
    """Pallas implementation of the module's default (no-cache) forward path."""
    B, T, E = hidden_states.shape
    head_dim = E // num_heads
    assert num_heads * head_dim == E
    use_mask = attention_mask is not None
    out_dtype = hidden_states.dtype
    if compute_dtype is None:
        compute_dtype = hidden_states.dtype

    # block_q only needs sublane (8) granularity; block_k is the minor dim of
    # the mask block, so with a mask it must be lane (128) granular or full T.
    block_q = _choose_block(T, block_q, lane=False)
    block_k = _choose_block(T, block_k, lane=use_mask)
    nq, nk = T // block_q, T // block_k

    # bf16 (or caller-chosen) matmul operands, f32 biases & accumulation.
    x = hidden_states.astype(compute_dtype)
    wq = params["wq"].astype(compute_dtype)
    wo = params["wo"].astype(compute_dtype)
    wkv = jnp.concatenate([params["wk"], params["wv"]], axis=1).astype(compute_dtype)
    bq = params["bq"].astype(jnp.float32)
    bo = params["bo"].astype(jnp.float32)
    bkv = jnp.concatenate([params["bk"], params["bv"]], axis=1).astype(jnp.float32)

    kernel = _make_kernel(num_heads, head_dim, block_q, block_k, use_mask)

    def const_spec(shape):
        # Weights/biases: same block every grid step (Pallas elides the refetch).
        # TODO(synk): pipeline_mode=pl.Buffered(1) would halve their VMEM
        # footprint; kept at the default for portability across jax versions.
        return pl.BlockSpec(shape, lambda b, qi, ki: (0,) * len(shape))

    in_specs = [
        pl.BlockSpec((1, block_q, E), lambda b, qi, ki: (b, qi, 0)),   # x -> Q
        pl.BlockSpec((1, block_k, E), lambda b, qi, ki: (b, ki, 0)),   # x -> K/V
    ]
    args = [x, x]
    if use_mask:
        in_specs.append(
            pl.BlockSpec((1, block_q, block_k), lambda b, qi, ki: (b, qi, ki)))
        args.append(attention_mask)
    in_specs += [
        const_spec((E, E)), const_spec((1, E)),                         # q_proj
        const_spec((E, 2 * head_dim)), const_spec((1, 2 * head_dim)),   # fused k/v
        const_spec((E, E)), const_spec((1, E)),                         # out_proj
    ]
    args += [wq, bq, wkv, bkv, wo, bo]

    rows = num_heads * block_q
    return pl.pallas_call(
        kernel,
        out_shape=jax.ShapeDtypeStruct((B, T, E), out_dtype),
        grid_spec=pltpu.PrefetchScalarGridSpec(
            num_scalar_prefetch=0,
            grid=(B, nq, nk),
            in_specs=in_specs,
            out_specs=pl.BlockSpec((1, block_q, E), lambda b, qi, ki: (b, qi, 0)),
            scratch_shapes=[
                pltpu.VMEM((rows, head_dim), compute_dtype),   # scaled head-batched Q
                pltpu.VMEM((rows, 1), jnp.float32),            # running max (m)
                pltpu.VMEM((rows, 1), jnp.float32),            # running denom (l)
                pltpu.VMEM((rows, head_dim), jnp.float32),     # context accumulator
            ],
        ),
        compiler_params=pltpu.CompilerParams(
            # batch & q-tiles parallel (megacore); kv-tiles is the reduction.
            dimension_semantics=("parallel", "parallel", "arbitrary"),
            vmem_limit_bytes=32 * 1024 * 1024,
        ),
    )(*args)


# TODO(synk): use_cache / cross-attention KV-cache branches, layer_head_mask
# scaling and dropout>0 are not exercised by the default forward path and are
# not implemented (dropout p=0.0 is the identity).


def reference(hidden, params, num_heads, attention_mask=None):
    """Pure-JAX reference mirroring the PyTorch forward (default path)."""
    B, T, E = hidden.shape
    Hd = E // num_heads
    q = hidden @ params["wq"] + params["bq"]                  # (B, T, E)
    k = hidden @ params["wk"] + params["bk"]                  # (B, T, Hd)
    v = hidden @ params["wv"] + params["bv"]                  # (B, T, Hd)
    q = q.reshape(B, T, num_heads, Hd).transpose(0, 2, 1, 3)  # (B, H, T, Hd)
    k = k[:, None, :, :]                                      # (B, 1, T, Hd)
    v = v[:, None, :, :]
    scores = jnp.einsum("bhqd,bhkd->bhqk", q, k) / math.sqrt(Hd)
    if attention_mask is not None:
        scores = jnp.where(attention_mask[:, None, :, :] == 0, -jnp.inf, scores)
    scores = jax.nn.softmax(scores, axis=-1)
    ctx = jnp.einsum("bhqk,bhkd->bhqd", scores, v)
    ctx = ctx.transpose(0, 2, 1, 3).reshape(B, T, E)
    return ctx @ params["wo"] + params["bo"]


def init_params(key, embed_dim, num_heads):
    head_dim = embed_dim // num_heads
    ks = jax.random.split(key, 8)
    s = 0.05
    return {
        "wq": s * jax.random.normal(ks[0], (embed_dim, embed_dim), jnp.float32),
        "bq": s * jax.random.normal(ks[1], (1, embed_dim), jnp.float32),
        "wk": s * jax.random.normal(ks[2], (embed_dim, head_dim), jnp.float32),
        "bk": s * jax.random.normal(ks[3], (1, head_dim), jnp.float32),
        "wv": s * jax.random.normal(ks[4], (embed_dim, head_dim), jnp.float32),
        "bv": s * jax.random.normal(ks[5], (1, head_dim), jnp.float32),
        "wo": s * jax.random.normal(ks[6], (embed_dim, embed_dim), jnp.float32),
        "bo": s * jax.random.normal(ks[7], (1, embed_dim), jnp.float32),
    }


if __name__ == "__main__":
    B, T, E, H = 2, 8, 32, 4

    key = jax.random.PRNGKey(0)
    k_x, k_p, k_x2 = jax.random.split(key, 3)
    hidden = jax.random.normal(k_x, (B, T, E), jnp.float32)
    params = init_params(k_p, E, H)

    # 1) default path: no attention mask (f32 compute)
    out = jax.block_until_ready(multiquery_attention(hidden, params, H))
    ref = reference(hidden, params, H)
    assert jnp.allclose(out, ref, atol=2e-3, rtol=2e-3), "no-mask mismatch"

    # 2) causal attention mask (mask == 0 -> masked out)
    causal = jnp.broadcast_to(jnp.tril(jnp.ones((T, T), jnp.float32)), (B, T, T))
    out_m = jax.block_until_ready(
        multiquery_attention(hidden, params, H, attention_mask=causal))
    ref_m = reference(hidden, params, H, attention_mask=causal)
    assert jnp.allclose(out_m, ref_m, atol=2e-3, rtol=2e-3), "masked mismatch"

    # 3) multi-tile grid (2 q-tiles x 2 kv-tiles) exercising online softmax
    T2 = 16
    hidden2 = jax.random.normal(k_x2, (B, T2, E), jnp.float32)
    out_t = jax.block_until_ready(
        multiquery_attention(hidden2, params, H, block_q=8, block_k=8))
    ref_t = reference(hidden2, params, H)
    assert jnp.allclose(out_t, ref_t, atol=2e-3, rtol=2e-3), "multi-tile mismatch"

    # 3b) multi-q-tile with mask (mask forces block_k == T)
    causal2 = jnp.broadcast_to(jnp.tril(jnp.ones((T2, T2), jnp.float32)),
                               (B, T2, T2))
    out_tm = jax.block_until_ready(
        multiquery_attention(hidden2, params, H, attention_mask=causal2,
                             block_q=8, block_k=8))
    ref_tm = reference(hidden2, params, H, attention_mask=causal2)
    assert jnp.allclose(out_tm, ref_tm, atol=2e-3, rtol=2e-3), \
        "multi-tile masked mismatch"

    # 4) bf16 matmul operands (f32 accumulation), as recommended for v6e/v7x
    out_bf = jax.block_until_ready(
        multiquery_attention(hidden, params, H, attention_mask=causal,
                             compute_dtype=jnp.bfloat16))
    assert out_bf.dtype == hidden.dtype
    assert jnp.allclose(out_bf, ref_m, atol=6e-2, rtol=6e-2), "bf16 mismatch"

    print("KERNEL_OK")
</pallas_src>

<mosaic_0001>
module attributes {stable_mosaic.version = 11 : i64} {
  func.func @kernel(%arg0: i32, %arg1: i32, %arg2: i32, %arg3: memref<1x8x32xf32, #tpu.memory_space<vmem>>, %arg4: memref<1x8x32xf32, #tpu.memory_space<vmem>>, %arg5: memref<32x32xf32, #tpu.memory_space<vmem>>, %arg6: memref<1x32xf32, #tpu.memory_space<vmem>>, %arg7: memref<32x16xf32, #tpu.memory_space<vmem>>, %arg8: memref<1x16xf32, #tpu.memory_space<vmem>>, %arg9: memref<32x32xf32, #tpu.memory_space<vmem>>, %arg10: memref<1x32xf32, #tpu.memory_space<vmem>>, %arg11: memref<1x8x32xf32, #tpu.memory_space<vmem>>, %arg12: memref<32x8xf32, #tpu.memory_space<vmem>>, %arg13: memref<32x1xf32, #tpu.memory_space<vmem>>, %arg14: memref<32x1xf32, #tpu.memory_space<vmem>>, %arg15: memref<32x8xf32, #tpu.memory_space<vmem>>) attributes {dimension_semantics = [#tpu.dimension_semantics<parallel>, #tpu.dimension_semantics<parallel>, #tpu.dimension_semantics<arbitrary>], iteration_bounds = array<i64: 2, 1, 1>, scalar_prefetch = 0 : i64, scratch_operands = 4 : i64, tpu.core_type = #tpu.core_type<tc>, window_params = [{transform_indices = @transform_0, window_bounds = array<i64: 1, 8, 32>}, {transform_indices = @transform_1, window_bounds = array<i64: 1, 8, 32>}, {pipeline_mode = #tpu.pipeline_mode<synchronous>, transform_indices = @transform_2, window_bounds = array<i64: 32, 32>}, {pipeline_mode = #tpu.pipeline_mode<synchronous>, transform_indices = @transform_3, window_bounds = array<i64: 1, 32>}, {pipeline_mode = #tpu.pipeline_mode<synchronous>, transform_indices = @transform_4, window_bounds = array<i64: 32, 16>}, {pipeline_mode = #tpu.pipeline_mode<synchronous>, transform_indices = @transform_5, window_bounds = array<i64: 1, 16>}, {pipeline_mode = #tpu.pipeline_mode<synchronous>, transform_indices = @transform_6, window_bounds = array<i64: 32, 32>}, {pipeline_mode = #tpu.pipeline_mode<synchronous>, transform_indices = @transform_7, window_bounds = array<i64: 1, 32>}, {transform_indices = @transform_8, window_bounds = array<i64: 1, 8, 32>}]} {
    %c0_i32 = arith.constant 0 : i32
    %0 = arith.cmpi eq, %arg2, %c0_i32 : i32
    %1 = arith.extui %0 : i1 to i32
    %c0_i32_0 = arith.constant 0 : i32
    %2 = arith.cmpi ne, %1, %c0_i32_0 : i32
    scf.if %2 {
      %c0_27 = arith.constant 0 : index
      %c0_28 = arith.constant 0 : index
      %c0_29 = arith.constant 0 : index
      %39 = vector.load %arg3[%c0_27, %c0_28, %c0_29] : memref<1x8x32xf32, #tpu.memory_space<vmem>>, vector<1x8x32xf32>
      %40 = vector.shape_cast %39 : vector<1x8x32xf32> to vector<8x32xf32>
      %c0_30 = arith.constant 0 : index
      %c0_31 = arith.constant 0 : index
      %41 = vector.load %arg5[%c0_30, %c0_31] : memref<32x32xf32, #tpu.memory_space<vmem>>, vector<32x32xf32>
      %cst_32 = arith.constant dense<0.000000e+00> : vector<8x32xf32>
      %42 = tpu.matmul %40, %41, %cst_32 {dimension_numbers = #tpu.dot_dimension_numbers<[1], [0], [0], [1], [0, 0, 1, 1], [], []>} : vector<8x32xf32>, vector<32x32xf32>, vector<8x32xf32> -> vector<8x32xf32>
      %c0_33 = arith.constant 0 : index
      %c0_34 = arith.constant 0 : index
      %43 = vector.load %arg6[%c0_33, %c0_34] : memref<1x32xf32, #tpu.memory_space<vmem>>, vector<1x32xf32>
      %44 = vector.broadcast %43 : vector<1x32xf32> to vector<8x32xf32>
      %45 = arith.addf %42, %44 : vector<8x32xf32>
      %cst_35 = arith.constant 0.353553385 : f32
      %46 = vector.broadcast %cst_35 : f32 to vector<8x32xf32>
      %47 = arith.mulf %45, %46 : vector<8x32xf32>
      %48 = vector.extract_strided_slice %47 {offsets = [0, 0], sizes = [8, 8], strides = [1, 1]} : vector<8x32xf32> to vector<8x8xf32>
      %49 = vector.extract_strided_slice %47 {offsets = [0, 8], sizes = [8, 8], strides = [1, 1]} : vector<8x32xf32> to vector<8x8xf32>
      %50 = vector.extract_strided_slice %47 {offsets = [0, 16], sizes = [8, 8], strides = [1, 1]} : vector<8x32xf32> to vector<8x8xf32>
      %51 = vector.extract_strided_slice %47 {offsets = [0, 24], sizes = [8, 8], strides = [1, 1]} : vector<8x32xf32> to vector<8x8xf32>
      %52 = tpu.concatenate %48, %49, %50, %51 in 0 : vector<8x8xf32>, vector<8x8xf32>, vector<8x8xf32>, vector<8x8xf32> -> vector<32x8xf32>
      %c0_36 = arith.constant 0 : index
      %c0_37 = arith.constant 0 : index
      %53 = vector.load %arg12[%c0_36, %c0_37] : memref<32x8xf32, #tpu.memory_space<vmem>>, vector<32x8xf32>
      tpu.vector_store %arg12[%c0_36, %c0_37], %52 {strides = array<i32>} : memref<32x8xf32, #tpu.memory_space<vmem>>, vector<32x8xf32>,
      %cst_38 = arith.constant 0xFF800000 : f32
      %54 = vector.broadcast %cst_38 : f32 to vector<32x1xf32>
      %c0_39 = arith.constant 0 : index
      %c0_40 = arith.constant 0 : index
      %55 = vector.load %arg13[%c0_39, %c0_40] : memref<32x1xf32, #tpu.memory_space<vmem>>, vector<32x1xf32>
      tpu.vector_store %arg13[%c0_39, %c0_40], %54 {strides = array<i32>} : memref<32x1xf32, #tpu.memory_space<vmem>>, vector<32x1xf32>,
      %cst_41 = arith.constant 0.000000e+00 : f32
      %56 = vector.broadcast %cst_41 : f32 to vector<32x1xf32>
      %c0_42 = arith.constant 0 : index
      %c0_43 = arith.constant 0 : index
      %57 = vector.load %arg14[%c0_42, %c0_43] : memref<32x1xf32, #tpu.memory_space<vmem>>, vector<32x1xf32>
      tpu.vector_store %arg14[%c0_42, %c0_43], %56 {strides = array<i32>} : memref<32x1xf32, #tpu.memory_space<vmem>>, vector<32x1xf32>,
      %cst_44 = arith.constant 0.000000e+00 : f32
      %58 = vector.broadcast %cst_44 : f32 to vector<32x8xf32>
      %c0_45 = arith.constant 0 : index
      %c0_46 = arith.constant 0 : index
      %59 = vector.load %arg15[%c0_45, %c0_46] : memref<32x8xf32, #tpu.memory_space<vmem>>, vector<32x8xf32>
      tpu.vector_store %arg15[%c0_45, %c0_46], %58 {strides = array<i32>} : memref<32x8xf32, #tpu.memory_space<vmem>>, vector<32x8xf32>,
    } else {
    }
    %c0 = arith.constant 0 : index
    %c0_1 = arith.constant 0 : index
    %c0_2 = arith.constant 0 : index
    %3 = vector.load %arg4[%c0, %c0_1, %c0_2] : memref<1x8x32xf32, #tpu.memory_space<vmem>>, vector<1x8x32xf32>
    %4 = vector.shape_cast %3 : vector<1x8x32xf32> to vector<8x32xf32>
    %c0_3 = arith.constant 0 : index
    %c0_4 = arith.constant 0 : index
    %5 = vector.load %arg7[%c0_3, %c0_4] : memref<32x16xf32, #tpu.memory_space<vmem>>, vector<32x16xf32>
    %cst = arith.constant dense<0.000000e+00> : vector<8x16xf32>
    %6 = tpu.matmul %4, %5, %cst {dimension_numbers = #tpu.dot_dimension_numbers<[1], [0], [0], [1], [0, 0, 1, 1], [], []>} : vector<8x32xf32>, vector<32x16xf32>, vector<8x16xf32> -> vector<8x16xf32>
    %c0_5 = arith.constant 0 : index
    %c0_6 = arith.constant 0 : index
    %7 = vector.load %arg8[%c0_5, %c0_6] : memref<1x16xf32, #tpu.memory_space<vmem>>, vector<1x16xf32>
    %8 = vector.broadcast %7 : vector<1x16xf32> to vector<8x16xf32>
    %9 = arith.addf %6, %8 : vector<8x16xf32>
    %10 = vector.extract_strided_slice %9 {offsets = [0, 0], sizes = [8, 8], strides = [1, 1]} : vector<8x16xf32> to vector<8x8xf32>
    %11 = vector.extract_strided_slice %9 {offsets = [0, 8], sizes = [8, 8], strides = [1, 1]} : vector<8x16xf32> to vector<8x8xf32>
    %c0_7 = arith.constant 0 : index
    %c0_8 = arith.constant 0 : index
    %12 = vector.load %arg12[%c0_7, %c0_8] : memref<32x8xf32, #tpu.memory_space<vmem>>, vector<32x8xf32>
    %cst_9 = arith.constant dense<0.000000e+00> : vector<32x8xf32>
    %13 = tpu.matmul %12, %10, %cst_9 {dimension_numbers = #tpu.dot_dimension_numbers<[1], [1], [0], [0], [0, 0, 1, 0], [], []>} : vector<32x8xf32>, vector<8x8xf32>, vector<32x8xf32> -> vector<32x8xf32>
    %c0_10 = arith.constant 0 : index
    %c0_11 = arith.constant 0 : index
    %14 = vector.load %arg13[%c0_10, %c0_11] : memref<32x1xf32, #tpu.memory_space<vmem>>, vector<32x1xf32>
    %cst_12 = arith.constant dense<0xFF800000> : vector<32xf32>
    %15 = vector.multi_reduction <maximumf>, %13, %cst_12 [1] : vector<32x8xf32> to vector<32xf32>
    %16 = vector.shape_cast %15 : vector<32xf32> to vector<32x1xf32>
    %17 = arith.maximumf %14, %16 : vector<32x1xf32>
    %18 = arith.subf %14, %17 : vector<32x1xf32>
    %19 = math.exp %18 : vector<32x1xf32>
    %20 = vector.broadcast %17 : vector<32x1xf32> to vector<32x8xf32>
    %21 = arith.subf %13, %20 : vector<32x8xf32>
    %22 = math.exp %21 : vector<32x8xf32>
    %c0_13 = arith.constant 0 : index
    %c0_14 = arith.constant 0 : index
    %23 = vector.load %arg14[%c0_13, %c0_14] : memref<32x1xf32, #tpu.memory_space<vmem>>, vector<32x1xf32>
    %24 = arith.mulf %19, %23 : vector<32x1xf32>
    %cst_15 = arith.constant dense<0.000000e+00> : vector<32xf32>
    %25 = vector.multi_reduction <add>, %22, %cst_15 [1] : vector<32x8xf32> to vector<32xf32>
    %26 = vector.shape_cast %25 : vector<32xf32> to vector<32x1xf32>
    %27 = arith.addf %24, %26 : vector<32x1xf32>
    %c0_16 = arith.constant 0 : index
    %c0_17 = arith.constant 0 : index
    %28 = vector.load %arg14[%c0_16, %c0_17] : memref<32x1xf32, #tpu.memory_space<vmem>>, vector<32x1xf32>
    tpu.vector_store %arg14[%c0_16, %c0_17], %27 {strides = array<i32>} : memref<32x1xf32, #tpu.memory_space<vmem>>, vector<32x1xf32>,
    %c0_18 = arith.constant 0 : index
    %c0_19 = arith.constant 0 : index
    %29 = vector.load %arg15[%c0_18, %c0_19] : memref<32x8xf32, #tpu.memory_space<vmem>>, vector<32x8xf32>
    %30 = vector.broadcast %19 : vector<32x1xf32> to vector<32x8xf32>
    %31 = arith.mulf %30, %29 : vector<32x8xf32>
    %cst_20 = arith.constant dense<0.000000e+00> : vector<32x8xf32>
    %32 = tpu.matmul %22, %11, %cst_20 {dimension_numbers = #tpu.dot_dimension_numbers<[1], [0], [0], [1], [0, 0, 1, 1], [], []>} : vector<32x8xf32>, vector<8x8xf32>, vector<32x8xf32> -> vector<32x8xf32>
    %33 = arith.addf %31, %32 : vector<32x8xf32>
    %c0_21 = arith.constant 0 : index
    %c0_22 = arith.constant 0 : index
    %34 = vector.load %arg15[%c0_21, %c0_22] : memref<32x8xf32, #tpu.memory_space<vmem>>, vector<32x8xf32>
    tpu.vector_store %arg15[%c0_21, %c0_22], %33 {strides = array<i32>} : memref<32x8xf32, #tpu.memory_space<vmem>>, vector<32x8xf32>,
    %c0_23 = arith.constant 0 : index
    %c0_24 = arith.constant 0 : index
    %35 = vector.load %arg13[%c0_23, %c0_24] : memref<32x1xf32, #tpu.memory_space<vmem>>, vector<32x1xf32>
    tpu.vector_store %arg13[%c0_23, %c0_24], %17 {strides = array<i32>} : memref<32x1xf32, #tpu.memory_space<vmem>>, vector<32x1xf32>,
    %c0_i32_25 = arith.constant 0 : i32
    %36 = arith.cmpi eq, %arg2, %c0_i32_25 : i32
    %37 = arith.extui %36 : i1 to i32
    %c0_i32_26 = arith.constant 0 : i32
    %38 = arith.cmpi ne, %37, %c0_i32_26 : i32
    scf.if %38 {
      %c0_27 = arith.constant 0 : index
      %c0_28 = arith.constant 0 : index
      %39 = vector.load %arg15[%c0_27, %c0_28] : memref<32x8xf32, #tpu.memory_space<vmem>>, vector<32x8xf32>
      %c0_29 = arith.constant 0 : index
      %c0_30 = arith.constant 0 : index
      %40 = vector.load %arg14[%c0_29, %c0_30] : memref<32x1xf32, #tpu.memory_space<vmem>>, vector<32x1xf32>
      %41 = vector.broadcast %40 : vector<32x1xf32> to vector<32x8xf32>
      %42 = arith.divf %39, %41 : vector<32x8xf32>
      %43 = vector.extract_strided_slice %42 {offsets = [0, 0], sizes = [8, 8], strides = [1, 1]} : vector<32x8xf32> to vector<8x8xf32>
      %44 = vector.extract_strided_slice %42 {offsets = [8, 0], sizes = [8, 8], strides = [1, 1]} : vector<32x8xf32> to vector<8x8xf32>
      %45 = vector.extract_strided_slice %42 {offsets = [16, 0], sizes = [8, 8], strides = [1, 1]} : vector<32x8xf32> to vector<8x8xf32>
      %46 = vector.extract_strided_slice %42 {offsets = [24, 0], sizes = [8, 8], strides = [1, 1]} : vector<32x8xf32> to vector<8x8xf32>
      %47 = tpu.concatenate %43, %44, %45, %46 in 1 : vector<8x8xf32>, vector<8x8xf32>, vector<8x8xf32>, vector<8x8xf32> -> vector<8x32xf32>
      %c0_31 = arith.constant 0 : index
      %c0_32 = arith.constant 0 : index
      %48 = vector.load %arg9[%c0_31, %c0_32] : memref<32x32xf32, #tpu.memory_space<vmem>>, vector<32x32xf32>
      %cst_33 = arith.constant dense<0.000000e+00> : vector<8x32xf32>
      %49 = tpu.matmul %47, %48, %cst_33 {dimension_numbers = #tpu.dot_dimension_numbers<[1], [0], [0], [1], [0, 0, 1, 1], [], []>} : vector<8x32xf32>, vector<32x32xf32>, vector<8x32xf32> -> vector<8x32xf32>
      %c0_34 = arith.constant 0 : index
      %c0_35 = arith.constant 0 : index
      %50 = vector.load %arg10[%c0_34, %c0_35] : memref<1x32xf32, #tpu.memory_space<vmem>>, vector<1x32xf32>
      %51 = vector.broadcast %50 : vector<1x32xf32> to vector<8x32xf32>
      %52 = arith.addf %49, %51 : vector<8x32xf32>
      %c0_36 = arith.constant 0 : index
      %c0_37 = arith.constant 0 : index
      %c0_38 = arith.constant 0 : index
      %53 = vector.load %arg11[%c0_36, %c0_37, %c0_38] : memref<1x8x32xf32, #tpu.memory_space<vmem>>, vector<1x8x32xf32>
      %54 = vector.shape_cast %53 : vector<1x8x32xf32> to vector<8x32xf32>
      %55 = vector.shape_cast %52 : vector<8x32xf32> to vector<1x8x32xf32>
      tpu.vector_store %arg11[%c0_36, %c0_37, %c0_38], %55 {strides = array<i32>} : memref<1x8x32xf32, #tpu.memory_space<vmem>>, vector<1x8x32xf32>,
    } else {
    }
    return
  }
  func.func @transform_0(%arg0: i32, %arg1: i32, %arg2: i32) -> (i32, i32, i32) {
    %c0_i32 = arith.constant 0 : i32
    %c0_i32_0 = arith.constant 0 : i32
    return %arg0, %arg1, %c0_i32 : i32, i32, i32
  }
  func.func @transform_1(%arg0: i32, %arg1: i32, %arg2: i32) -> (i32, i32, i32) {
    %c0_i32 = arith.constant 0 : i32
    %c0_i32_0 = arith.constant 0 : i32
    return %arg0, %arg2, %c0_i32 : i32, i32, i32
  }
  func.func @transform_2(%arg0: i32, %arg1: i32, %arg2: i32) -> (i32, i32) {
    %c0_i32 = arith.constant 0 : i32
    %c0_i32_0 = arith.constant 0 : i32
    %c0_i32_1 = arith.constant 0 : i32
    return %c0_i32, %c0_i32_0 : i32, i32
  }
  func.func @transform_3(%arg0: i32, %arg1: i32, %arg2: i32) -> (i32, i32) {
    %c0_i32 = arith.constant 0 : i32
    %c0_i32_0 = arith.constant 0 : i32
    %c0_i32_1 = arith.constant 0 : i32
    return %c0_i32, %c0_i32_0 : i32, i32
  }
  func.func @transform_4(%arg0: i32, %arg1: i32, %arg2: i32) -> (i32, i32) {
    %c0_i32 = arith.constant 0 : i32
    %c0_i32_0 = arith.constant 0 : i32
    %c0_i32_1 = arith.constant 0 : i32
    return %c0_i32, %c0_i32_0 : i32, i32
  }
  func.func @transform_5(%arg0: i32, %arg1: i32, %arg2: i32) -> (i32, i32) {
    %c0_i32 = arith.constant 0 : i32
    %c0_i32_0 = arith.constant 0 : i32
    %c0_i32_1 = arith.constant 0 : i32
    return %c0_i32, %c0_i32_0 : i32, i32
  }
  func.func @transform_6(%arg0: i32, %arg1: i32, %arg2: i32) -> (i32, i32) {
    %c0_i32 = arith.constant 0 : i32
    %c0_i32_0 = arith.constant 0 : i32
    %c0_i32_1 = arith.constant 0 : i32
    return %c0_i32, %c0_i32_0 : i32, i32
  }
  func.func @transform_7(%arg0: i32, %arg1: i32, %arg2: i32) -> (i32, i32) {
    %c0_i32 = arith.constant 0 : i32
    %c0_i32_0 = arith.constant 0 : i32
    %c0_i32_1 = arith.constant 0 : i32
    return %c0_i32, %c0_i32_0 : i32, i32
  }
  func.func @transform_8(%arg0: i32, %arg1: i32, %arg2: i32) -> (i32, i32, i32) {
    %c0_i32 = arith.constant 0 : i32
    %c0_i32_0 = arith.constant 0 : i32
    return %arg0, %arg1, %c0_i32 : i32, i32, i32
  }
}

</mosaic_0001>

<bundles_post_ra>
// kernel: tpu_custom_call.1
= control target key start
LH: loop header
LB: loop body
LE: loop exit
PB: predicated region body
PF: predicated region fallthrough
CT: control target
= control target key end

     0   :  { %s1984_s0 = inlined_call_operand.hbm [shape: f32[2,8,32], index: 0, kind: input, shape index: {}]   ;;  %s1985_s1 = inlined_call_operand.hbm [shape: f32[2,8,32], index: 1, kind: input, shape index: {}]   ;;  %s1986_s2 = inlined_call_operand.vmem [shape: f32[32,32], index: 2, kind: input, shape index: {}]   ;;  %s1987_s3 = inlined_call_operand.vmem [shape: f32[1,32], index: 3, kind: input, shape index: {}]   ;;  %s1988_s4 = inlined_call_operand.vmem [shape: f32[32,16], index: 4, kind: input, shape index: {}]   ;;  %s1989_s5 = inlined_call_operand.vmem [shape: f32[1,16], index: 5, kind: input, shape index: {}]   ;;  %s1990_s6 = inlined_call_operand.vmem [shape: f32[32,32], index: 6, kind: input, shape index: {}]   ;;  %s1991_s7 = inlined_call_operand.vmem [shape: f32[1,32], index: 7, kind: input, shape index: {}]   ;;  %s1992_s8 = inlined_call_operand.hbm [shape: f32[2,8,32], index: 8, kind: output, shape index: {}]  }
   0x1   :  { %1999 = sst [smem:[#allocation17_spill]] %s1984_s0 }
   0x2   :  { %13 = vsyncpa [#allocation7], 0 }
   0x3   :  { %15 = vsyncpa [#allocation7 + $0x1], 0 }
   0x4   :  { %16 = vsyncpa [#allocation10], 0 }
   0x5   :  { %18 = vsyncpa [#allocation10 + $0x1], 0 }
   0x6   :  { %19 = vsyncpa [#allocation8], 0 }
   0x7   :  { %21 = vsyncpa [#allocation8 + $0x1], 0  ;;  %s1625_s27 = smov 0   ;;  %s1627_s28 = smov 0  }
   0x8   :  { %s1629_s29 = smov 0   ;;  %s1631_s30 = smov 0  }
   0x9   :  { %s1633_s9 = smov 0   ;;  %s1635_s10 = smov 0  }
   0xa LB: > { %2000 = sst [smem:[#allocation15_spill]] %s1560_s9  ;;  %s1191_s11 = sadd.s32 4294967295, %s1564_s10   ;;  %s1564_s10 = sphi %s1635_s10, %s27_s10   ;;  %s1560_s9 = sphi %s1633_s9, %s2019_s9   ;;  %s1556_s30 = sphi %s1631_s30, %s2018_s30   ;;  %s1552_s29 = sphi %s1629_s29, %s2022_s29   ;;  %s1548_s28 = sphi %s1627_s28, %s2021_s28   ;;  %s1544_s27 = sphi %s1625_s27, %s2020_s27  }
   0xb   : > { %s1192_s12 = sadd.s32 4294967294, %s1564_s10   ;;  %s46_s13 = sadd.s32 1, %s1560_s9 }
   0xc   : > { %s55_s14 = sadd.s32 1, %s1552_s29  ;;  %p48_p0 = scmp.ge.s32.totalorder %s46_s13, 2 }
   0xd   : > { %p62_p1 = scmp.ne.s32.totalorder %s1552_s29, %s1548_s28  ;;  %p63_p2 = scmp.eq.s32.totalorder %s1564_s10, 0 }
   0xe   : > { %p68_p3 = scmp.ne.s32.totalorder %s1548_s28, %s1544_s27  ;;  %s2024_s13 = smov (%p48_p0, %s46_s13), 0 }
   0xf   : > { %2001 = sst [smem:[#allocation16_spill]] %s2024_s13  ;;  %p1666_p4 = por %p63_p2, %p62_p1 }
  0x10   : > { %p69_p5 = scmp.eq.s32.totalorder %s1191_s11, 0  ;;  %s50_s16 = ssub.s32 %s1560_s9, %s2024_s13 }
  0x11   : > { %p248_p6 = scmp.eq.s32.totalorder %s1191_s11, 1  ;;  %p53_p7 = scmp.eq.s32.totalorder %s50_s16, 0 }
  0x12   : > { %p1672_p8 = por %p69_p5, %p68_p3  ;;  %p254_p10 = scmp.eq.s32.totalorder %s1192_s12, 1 }
  0x13   : > { %p1676_p9 = por %p248_p6, %p62_p1  ;;  %p1331_p13 = scmp.lt.s32.totalorder %s1564_s10, 2 }
  0x14   : > { %s2003_s17 = scalar_select %p1672_p8, 1, 0 }
  0x15   : > { %s2004_s18 = scalar_select %p1676_p9, 1, 0 }
  0x16   : > { %s1681_s19 = scalar_select %p53_p7, %s1552_s29, %s55_s14  }
  0x17   : > { %p1683_p11 = por %p254_p10, %p68_p3  ;;  %s1690_s21 = sand.u32 1, %s1552_s29  }
  0x18   : > { %s1993_s22 = sshll.u32 %s1690_s21, 3  ;;  %s1994_s23 = sshll.u32 %s1560_s9, 7 }
  0x19   : > { %s2005_s20 = scalar_select %p1683_p11, 1, 0 }
  0x1a   : > { %s2006_s0 = sld [smem:[#allocation17_spill]]  ;;  %s296_s11 = scalar_lea.vmem [#allocation6], %s1993_s22 }
  0x1b   : > { %s304_s12 = sshll.u32 %s296_s11, 4  ;;  %p1707_p0 = pnand %p1331_p13, %p1666_p4  ;;  %s1703_s12 = int_to_ptr.vmem [resolvable:$true] %s304_s12 }
  0x1c   : > { %s293_s16 = scalar_lea.sflag [#allocation7], %s1690_s21 }
  0x1d   : > { %p1420_p5 = pneg %p1707_p0 }
  0x20   : > { %s1699_s26 = scalar_lea.hbm %s2006_s0, %s1994_s23  ;;  %s1423_s15 = scalar_lea.hbm %s2006_s0, 256 }
  0x21   : > { %s1418_s24 = scalar_lea.hbm %s1699_s26, 128  ;;  %p1424_p4 = scmp.lt.u32.totalorder %s1699_s26, %s2006_s0 }
  0x22   : > { %p1419_p3 = scmp.ne.s32.totalorder %s1699_s26, %s1418_s24  ;;  %p1425_p10 = scmp.lt.u32.totalorder %s1423_s15, %s1418_s24 }
  0x23   : > { %p1427_p12 = scmp.lt.u32.totalorder %s1418_s24, %s1699_s26 }
  0x24   : > { %p1421_p6 = pnand %p1420_p5, %p1419_p3  ;;  %p1426_p13 = por %p1425_p10, %p1424_p4 }
  0x26   : > { %p1422_p7 = pneg %p1421_p6  ;;  %p1428_p1 = por %p1427_p12, %p1426_p13 }
  0x28   : > { %p1429_p2 = pnand %p1428_p1, %p1422_p7 }
  0x2a   : > { %1432 = shalt.err (!%p1429_p2)
}
  0x2b   : > { %s1433_s13 = scalar_lea.vmem %s1703_s12, 128  ;;  %s1566_s25 = smov [#allocation6]  }
  0x2c   : > { %p1434_p3 = scmp.ne.s32.totalorder %s1703_s12, %s1433_s13  ;;  %s1438_s11 = sshll.u32 %s1566_s25, 4  ;;  %s1439_s11 = int_to_ptr.vmem [resolvable:$false] %s1438_s11 }
  0x2d   : > { %s1440_s22 = scalar_lea.vmem %s1439_s11, 256  ;;  %p1441_p9 = scmp.lt.s32.totalorder %s1703_s12, %s1439_s11 }
  0x2e   : > { %p1436_p6 = pnand %p1434_p3, %p1420_p5  ;;  %p1442_p4 = scmp.lt.s32.totalorder %s1440_s22, %s1433_s13 }
  0x30   : > { %p1437_p11 = pneg %p1436_p6  ;;  %p1443_p10 = por %p1442_p4, %p1441_p9 }
  0x32   : > { %p1444_p12 = pnand %p1443_p10, %p1437_p11 }
  0x34   : > { %1447 = shalt.err (!%p1444_p12)
}
  0x35   : > { %1323 = dma.hbm_to_vmem [thread:$0]  (!%p1707_p0), %s1699_s26, 128, %s1703_s12, %s293_s16  }
  0x36   : > { %p2008_p1 = scmp.lt.s32.totalorder %s1564_s10, 3  ;;  %p2009_p2 = scmp.ge.s32.totalorder %s1564_s10, 1 }
  0x37   : > { %s2011_s13 = sshll.u32 %s1560_s9, 7  ;;  %s2012_s11 = sshll.u32 %s1690_s21, 3 }
  0x38   : > { %p1743_p7 = pnand %p2009_p2, %p2008_p1  ;;  %s1752_s25 = scalar_lea.hbm %s1985_s1, %s2011_s13 }
  0x39   : > { %s315_s22 = scalar_lea.vmem [#allocation9], %s2012_s11  ;;  %s312_s26 = scalar_lea.sflag [#allocation10], %s1690_s21 }
  0x3a   : > { %s2010_s23 = scalar_select %p1743_p7, 1, 0 }
  0x3b   : > { %s323_s0 = sshll.u32 %s315_s22, 4  ;;  %s1448_s12 = scalar_lea.hbm %s1752_s25, 128  ;;  %s324_s0 = int_to_ptr.vmem [resolvable:$true] %s323_s0 }
  0x3c   : > { %p1449_p9 = scmp.ne.s32.totalorder %s1752_s25, %s1448_s12  ;;  %s1453_s13 = scalar_lea.hbm %s1985_s1, 256 }
  0x3d   : > { %p1454_p3 = scmp.lt.u32.totalorder %s1752_s25, %s1985_s1  ;;  %p1455_p6 = scmp.lt.u32.totalorder %s1453_s13, %s1448_s12 }
  0x3e   : > { %p1451_p11 = pnand %p1449_p9, %p1420_p5  ;;  %p1457_p10 = scmp.lt.u32.totalorder %s1448_s12, %s1752_s25 }
  0x3f   : > { %p1456_p4 = por %p1455_p6, %p1454_p3 }
  0x40   : > { %p1452_p13 = pneg %p1451_p11 }
  0x41   : > { %p1458_p12 = por %p1457_p10, %p1456_p4 }
  0x43   : > { %p1459_p1 = pnand %p1458_p12, %p1452_p13 }
  0x45   : > { %1462 = shalt.err (!%p1459_p1)
}
  0x46   : > { %s1463_s21 = scalar_lea.vmem %s324_s0, 128  ;;  %s1567_s11 = smov [#allocation9]  }
  0x47   : > { %p1464_p2 = scmp.ne.s32.totalorder %s324_s0, %s1463_s21  ;;  %s1468_s9 = sshll.u32 %s1567_s11, 4  ;;  %s1469_s9 = int_to_ptr.vmem [resolvable:$false] %s1468_s9 }
  0x48   : > { %s1470_s22 = scalar_lea.vmem %s1469_s9, 256  ;;  %p1471_p8 = scmp.lt.s32.totalorder %s324_s0, %s1469_s9 }
  0x49   : > { %p1466_p9 = pnand %p1464_p2, %p1420_p5  ;;  %p1472_p7 = scmp.lt.s32.totalorder %s1470_s22, %s1463_s21 }
  0x4b   : > { %p1467_p11 = pneg %p1466_p9  ;;  %p1473_p3 = por %p1472_p7, %p1471_p8 }
  0x4d   : > { %p1474_p6 = pnand %p1473_p3, %p1467_p11 }
  0x4f   : > { %1477 = shalt.err (!%p1474_p6)
}
  0x50   : > { %1326 = dma.hbm_to_vmem [thread:$0]  (!%p1707_p0), %s1752_s25, 128, %s324_s0, %s312_s26  }
  0x51   : > { %p2013_p13 = scmp.ne.s32.totalorder %s2010_s23, 0 }
  0x52   : > { %s1779_s12 = sand.u32 (!%p2013_p13), 1, %s1548_s28   ;;  %p2014_p8 = scmp.ne.s32.totalorder (!%p2013_p13), %s2003_s17, 0 }
  0x53   : > { %332 = sbr.rel (%p2013_p13) target bundleno = 1590 (0x636), region = 52  ;;  %s1782_s16 = sshll.u32 (!%p2013_p13), %s1779_s12, 3 }
  0x54   : > { %s335_s13 = scalar_lea.sflag (!%p2013_p13), [#allocation7], %s1779_s12  ;;  %s338_s24 = scalar_lea.vmem (!%p2013_p13), [#allocation6], %s1782_s16 }
  0x5a   : > { %1531 = dma.done.wait (%p2014_p8), %s335_s13, 128  }
  0x5b   : > { %1533 = vsyncadd (%p2014_p8), %s335_s13, 4294967168  ;;  %s344_s0 = scalar_lea.sflag [#allocation10], %s1779_s12  ;;  %s347_s14 = scalar_lea.vmem [#allocation9], %s1782_s16 }
  0x5c   : > { %1535 = dma.done.wait (%p2014_p8), %s344_s0, 128  }
  0x5d   : > { %1537 = vsyncadd (%p2014_p8), %s344_s0, 4294967168  ;;  %v1568_v0 = vmov 0.0|0.0   ;;  %vm1569_vm0 = vmmov 0   ;;  %v1570_v1 = vmov 0.0   ;;  %v390_v2 = vld [vmem:[%s1986_s2] sm:$0xff]  ;;  %v391_v3 = vld [vmem:[%s1986_s2 + $0x8] sm:$0xff] }
  0x5e   : > { %1296 = vmatprep.subr.bf16.mxu0 %v1568_v0  ;;  %1255 = vmatprep.mubr.msk.f32.mxu0 %vm1569_vm0, %v1570_v1  ;;  %v392_v4 = vld [vmem:[%s1986_s2 + $0x10] sm:$0xff]  ;;  %v1297_v5 = vpack.c.bf16 %v391_v3, %v390_v2  ;;  %v393_v6 = vld [vmem:[%s1986_s2 + $0x18] sm:$0xff]  ;;  %v505_v7 = vld [vmem:[%s1988_s4] sm:$0xff]  ;;  %vm401_vm1 = vcmask 261120   ;;  %vm486_vm2 = vcmask 64512   ;;  %s1571_s9 = smov 104  }
  0x5f   : > { %1302 = vmatprep.subr.bf16.mxu1 %v1568_v0  ;;  %1266 = vmatprep.mubr.msk.f32.mxu1 %vm1569_vm0, %v1570_v1  ;;  %v506_v8 = vld [vmem:[%s1988_s4 + $0x8] sm:$0xff]  ;;  %v507_v9 = vld [vmem:[%s1988_s4 + $0x10] sm:$0xff]  ;;  %v508_v10 = vld [vmem:[%s1988_s4 + $0x18] sm:$0xff]  ;;  %v1300_v11 = vpack.c.bf16 %v393_v6, %v392_v4  ;;  %500 = vst.msk [vmem:[#allocation5] sm:$0xff] %vm486_vm2, %v1570_v1  ;;  %s1572_s22 = smov 120   ;;  %s1573_s13 = smov 112  }
  0x60   : > { %1298 = vmatpush3.bf16.msra.mxu0 %v1297_v5  ;;  %v1303_v12 = vpack.c.bf16 %v506_v8, %v505_v7  ;;  %v1306_v13 = vpack.c.bf16 %v508_v10, %v507_v9  ;;  %v389_v14 = vld [vmem:[%s338_s24] sm:$0xff]  ;;  %v504_v15 = vld [vmem:[%s347_s14] sm:$0xff]  ;;  %501 = vst.msk [vmem:[#allocation5 + $0x8] sm:$0xff] %vm486_vm2, %v1570_v1  ;;  %502 = vst.msk [vmem:[#allocation5 + $0x10] sm:$0xff] %vm486_vm2, %v1570_v1  ;;  %vm491_vm3 = vcmask 7168   ;;  %v1574_v32 = vmov -inf  }
  0x61   : > { %1299 = vmatprep.subr.bf16.mxu0 %v1568_v0  ;;  %503 = vst.msk [vmem:[#allocation5 + $0x18] sm:$0xff] %vm486_vm2, %v1570_v1  ;;  %v1203_v16 = vld [vmem:[%s1987_s3] ss:$0 sm:$0xff]  ;;  %v1575_v41 = vmov 0   ;;  %s1576_s14 = smov 8   ;;  %s1577_s11 = smov 16  }
  0x62   : > { %1304 = vmatpush3.bf16.msra.mxu1 %v1303_v12  ;;  %v1205_v18 = vld [vmem:[%s1989_s5] ss:$0 sm:$0xff]  ;;  %493 = vst.msk [vmem:[#allocation3 + $0x8] sm:$0xff] %vm491_vm3, %v1574_v32  ;;  %492 = vst.msk [vmem:[#allocation3] sm:$0xff] %vm491_vm3, %v1574_v32  ;;  %1393 = vset.pattern.permute.xlu1 %v1575_v41  ;;  %vm980_vm4 = vcmask 130048   ;;  %vm982_vm5 = vcmask 195584  }
  0x63   : > { %1305 = vmatprep.subr.bf16.mxu1 %v1568_v0  ;;  %494 = vst.msk [vmem:[#allocation3 + $0x10] sm:$0xff] %vm491_vm3, %v1574_v32  ;;  %495 = vst.msk [vmem:[#allocation3 + $0x18] sm:$0xff] %vm491_vm3, %v1574_v32  ;;  %1392 = vset.pattern.permute.xlu0 %v1575_v41  ;;  %s1219_s0 = sshll.u32 %s1556_s30, 7  ;;  %s384_s23 = scalar_lea.vmem [#allocation11], %s1782_s16 }
  0x64   : > { %1301 = vmatpush3.bf16.msra.mxu0 %v1300_v11  ;;  %496 = vst.msk [vmem:[#allocation4] sm:$0xff] %vm491_vm3, %v1570_v1  ;;  %497 = vst.msk [vmem:[#allocation4 + $0x8] sm:$0xff] %vm491_vm3, %v1570_v1  ;;  %s1084_s25 = sshll.u32 %s384_s23, 4  ;;  %s1934_s15 = scalar_lea.hbm %s1992_s8, %s1219_s0  ;;  %s1936_s25 = int_to_ptr.vmem [resolvable:$true] %s1084_s25 }
  0x65   : > { %498 = vst.msk [vmem:[#allocation4 + $0x10] sm:$0xff] %vm491_vm3, %v1570_v1  ;;  %499 = vst.msk [vmem:[#allocation4 + $0x18] sm:$0xff] %vm491_vm3, %v1570_v1  ;;  %s1070_s24 = scalar_lea.sflag [#allocation8], %s1779_s12  ;;  %s1478_s21 = scalar_lea.vmem %s1936_s25, 128 }
  0x66   : > { %1307 = vmatpush3.bf16.msra.mxu1 %v1306_v13  ;;  %p1479_p0 = scmp.ne.s32.totalorder %s1936_s25, %s1478_s21  ;;  %p2015_p5 = scmp.ne.s32.totalorder %s2004_s18, 0 }
  0x67   : > { %1256 = vmatmul.mubr.msk.f32.vlgmr.msra.gmra.mrb[0].mxu0 %vm401_vm1, %v389_v14  ;;  %s1579_s30 = smov [#allocation11]  }
  0x68   : > { %p1480_p7 = pnand %p1479_p0, %p2015_p5  ;;  %s1482_s16 = sshll.u32 %s1579_s30, 4  ;;  %s1483_s16 = int_to_ptr.vmem [resolvable:$false] %s1482_s16 }
  0x69   : > { %1267 = vmatmul.mubr.msk.f32.vlgmr.msra.gmra.mrb[0].mxu1 %vm401_vm1, %v504_v15  ;;  %v696_v42 = vld [vmem:[#allocation3 + $0x8] sm:$0xff]  ;;  %v1880_v43 = vld [vmem:[#allocation3] sm:$0xff]  ;;  %p1485_p10 = scmp.lt.s32.totalorder %s1936_s25, %s1483_s16 }
  0x6a   : > { %v698_v49 = vld [vmem:[#allocation3 + $0x18] sm:$0xff]  ;;  %v697_v51 = vld [vmem:[#allocation3 + $0x10] sm:$0xff]  ;;  %p1481_p4 = pneg %p1480_p7 }
 0x13a   : > { %v471_v17 = vpop.f32.mrb[0].mxu0 }
 0x13b   : > { %v472_v19 = vadd.f32 %v1203_v16, %v471_v17  ;;  %v1257_v20 = vpop.f32.mrb[1].mxu0 }
 0x13c   : > { %v586_v21 = vpop.f32.mrb[0].mxu1 }
 0x13d   : > { %v475_v22 = vmul.f32 0.35355338, %v472_v19  ;;  %v1846_v23 = vadd.f32 %v1205_v18, %v586_v21  ;;  %v1268_v24 = vpop.f32.mrb[1].mxu1 }
 0x13f   : > { %487 = vst.msk [vmem:[#allocation2] sm:$0xff] %vm486_vm2, %v475_v22  ;;  %483 = vrot.lane.b32.xlu1 %v475_v22, %s1571_s9  ;;  %477 = vrot.lane.b32.xlu0 %v475_v22, %s1572_s22  ;;  %s1578_s9 = smov 24  }
 0x140   : > { %1269 = vmatprep.subr.msk.mxu0 %vm486_vm2, %v1846_v23 }
 0x141   : > { %1270 = vmatpush3.xpose.msk.msra.mxu0 %vm486_vm2, %v1846_v23 }
 0x142   : > { %1308 = vmatprep.subr.bf16.mxu0 %v1568_v0 }
 0x143   : > { %480 = vrot.lane.b32.xlu0 %v475_v22, %s1573_s13 }
 0x146   : > { %v590_v25 = vld [vmem:[#allocation2] sm:$0xff] }
 0x147   : > { %1271 = vmatprep.mubr.msk.f32.mxu0 %vm486_vm2, %v590_v25 }
 0x1b1   : > { %v484_v26 = vpop.permute.xlu1 %483  ;;  %v478_v27 = vpop.permute.xlu0 %477 }
 0x1b2   : > { %490 = vst.msk [vmem:[#allocation2 + $0x18] sm:$0xff] %vm486_vm2, %v484_v26  ;;  %488 = vst.msk [vmem:[#allocation2 + $0x8] sm:$0xff] %vm486_vm2, %v478_v27  ;;  %v761_v27 = vld [vmem:[#allocation4 + $0x10] sm:$0xff] }
 0x1b5   : > { %v481_v28 = vpop.permute.xlu0 %480 }
 0x1b6   : > { %489 = vst.msk [vmem:[#allocation2 + $0x10] sm:$0xff] %vm486_vm2, %v481_v28 }
 0x1b9   : > { %v591_v29 = vld [vmem:[#allocation2 + $0x8] sm:$0xff]  ;;  %v593_v31 = vld [vmem:[#allocation2 + $0x18] sm:$0xff] }
 0x1ba   : > { %1272 = vmatmul.mubr.msk.f32.vlgmr.msra.gmra.mrb[2].mxu0 %vm486_vm2, %v591_v29 }
 0x1bd   : > { %v592_v30 = vld [vmem:[#allocation2 + $0x10] sm:$0xff] }
 0x1be   : > { %1274 = vmatprep.mubr.msk.f32.mxu0 %vm486_vm2, %v592_v30  ;;  %v762_v30 = vld [vmem:[#allocation4 + $0x18] sm:$0xff] }
 0x1bf   : > { %1275 = vmatmul.mubr.msk.f32.gmra.mrb[4].mxu0 %vm486_vm2, %v593_v31 }
 0x1c0   : > { %1293 = vmatprep.mubr.msk.f32.mxu0 %vm1569_vm0, %v1570_v1 }
 0x28d   : > { %v1273_v33 = vpop.f32.mrb[2].mxu0 }
 0x28e   : > { %v676_v34 = vpop.f32.mrb[3].mxu0  ;;  %v702_v35 = vsel %vm486_vm2, %v1273_v33, -inf }
 0x28f   : > { %703 = vmax.xlane.f32.xlu0 %v702_v35  ;;  %v699_v36 = vsel %vm486_vm2, %v676_v34, -inf }
 0x290   : > { %700 = vmax.xlane.f32.xlu1 %v699_v36  ;;  %v759_v36 = vld [vmem:[#allocation4] sm:$0xff] }
 0x292   : > { %v1276_v37 = vpop.f32.mrb[4].mxu0 }
 0x293   : > { %v686_v38 = vpop.f32.mrb[5].mxu0  ;;  %v708_v39 = vsel %vm486_vm2, %v1276_v37, -inf }
 0x294   : > { %709 = vmax.xlane.f32.xlu1 %v708_v39  ;;  %v705_v40 = vsel %vm486_vm2, %v686_v38, -inf }
 0x295   : > { %706 = vmax.xlane.f32.xlu0 %v705_v40 }
 0x31c   : > { %v704_v44 = vpop.xlane.xlu0 %703 }
 0x31d   : > { %v712_v45 = vmax.f32 %v696_v42, %v704_v44  ;;  %v701_v46 = vpop.xlane.xlu1 %700  ;;  %v789_v44 = vld [vmem:[#allocation5 + $0x8] sm:$0xff] }
 0x31e   : > { %v1883_v47 = vmax.f32 %v1880_v43, %v701_v46 }
 0x31f   : > { %v716_v48 = vsub.f32 %v696_v42, %v712_v45  ;;  %925 = vst.msk [vmem:[#allocation3 + $0x8] sm:$0xff] %vm491_vm3, %v712_v45  ;;  %734 = vperm.xlu1 %1393, %v712_v45  }
 0x320   : > { %v715_v50 = vsub.f32 %v1880_v43, %v1883_v47  ;;  %924 = vst.msk [vmem:[#allocation3] sm:$0xff] %vm491_vm3, %v1883_v47  ;;  %729 = vperm.xlu0 %1392, %v1883_v47  }
 0x321   : > { %v710_v52 = vpop.xlane.xlu1 %709  ;;  %v721_v17 = vmul.f32 1.442695, %v716_v48 }
 0x322   : > { %v714_v53 = vmax.f32 %v698_v49, %v710_v52  ;;  %v707_v54 = vpop.xlane.xlu0 %706  ;;  %v719_v22 = vmul.f32 1.442695, %v715_v50  ;;  %v791_v50 = vld [vmem:[#allocation5 + $0x18] sm:$0xff]  ;;  %v790_v52 = vld [vmem:[#allocation5 + $0x10] sm:$0xff] }
 0x323   : > { %v713_v55 = vmax.f32 %v697_v51, %v707_v54 }
 0x324   : > { %v718_v56 = vsub.f32 %v698_v49, %v714_v53  ;;  %927 = vst.msk [vmem:[#allocation3 + $0x18] sm:$0xff] %vm491_vm3, %v714_v53 }
 0x325   : > { %v717_v57 = vsub.f32 %v697_v51, %v713_v55  ;;  %926 = vst.msk [vmem:[#allocation3 + $0x10] sm:$0xff] %vm491_vm3, %v713_v55  ;;  %739 = vperm.xlu1 %1393, %v713_v55  }
 0x326   : > { %v725_v18 = vmul.f32 1.442695, %v718_v56 }
 0x327   : > { %v723_v15 = vmul.f32 1.442695, %v717_v57 }
 0x329   : > { %744 = vperm.xlu1 %1393, %v714_v53  }
 0x32d   : > { %816 = vrot.lane.b32.xlu1 %v1846_v23, %s1572_s22  ;;  %v760_v23 = vld [vmem:[#allocation4 + $0x8] sm:$0xff] }
 0x39e   : > { %v735_v58 = vpop.permute.xlu1 %734 }
 0x39f   : > { %v748_v59 = vsub.f32 %v1273_v33, %v735_v58  ;;  %v730_v60 = vpop.permute.xlu0 %729 }
 0x3a0   : > { %v747_v61 = vsub.f32 %v676_v34, %v730_v60 }
 0x3a1   : > { %v753_v62 = vmul.f32 1.442695, %v748_v59 }
 0x3a2   : > { %v751_v63 = vmul.f32 1.442695, %v747_v61  ;;  %v984_v61 = vld [vmem:[%s1990_s6] sm:$0xff] }
 0x3a3   : > { %1394 = vpow2.f32 %v753_v62  ;;  %v985_v62 = vld [vmem:[%s1990_s6 + $0x8] sm:$0xff] }
 0x3a4   : > { %1396 = vpow2.f32 %v751_v63  ;;  %v740_v1 = vpop.permute.xlu1 %739  ;;  %v1309_v63 = vpack.c.bf16 %v985_v62, %v984_v61 }
 0x3a5   : > { %v749_v2 = vsub.f32 %v686_v38, %v740_v1 }
 0x3a6   : > { %1310 = vmatpush3.bf16.msra.mxu0 %v1309_v63 }
 0x3a7   : > { %v755_v3 = vmul.f32 1.442695, %v749_v2  ;;  %1311 = vmatprep.subr.bf16.mxu0 %v1568_v0  ;;  %v986_v2 = vld [vmem:[%s1990_s6 + $0x10] sm:$0xff] }
 0x3a8   : > { %v745_v4 = vpop.permute.xlu1 %744 }
 0x3a9   : > { %1398 = vpow2.f32 %v755_v3  ;;  %v750_v5 = vsub.f32 %v1276_v37, %v745_v4  ;;  %v987_v3 = vld [vmem:[%s1990_s6 + $0x18] sm:$0xff] }
 0x3aa   : > { %v1312_v4 = vpack.c.bf16 %v987_v3, %v986_v2 }
 0x3ab   : > { %v757_v6 = vmul.f32 1.442695, %v750_v5  ;;  %v788_v5 = vld [vmem:[#allocation5] sm:$0xff] }
 0x3ac   : > { %v817_v7 = vpop.permute.xlu1 %816  ;;  %1313 = vmatpush3.bf16.msra.mxu0 %v1312_v4 }
 0x3ad   : > { %v1395_v8 = vpop.eup %1394  ;;  %1400 = vpow2.f32 %v757_v6  ;;  %1277 = vmatprep.subr.mxu1 %v817_v7 }
 0x3ae   : > { %v1397_v9 = vpop.eup %1396  ;;  %1278 = vmatpush3.msra.mxu1 %v817_v7  ;;  %v770_v10 = vsel %vm486_vm2, %v1395_v8, 0.0  ;;  %1402 = vpow2.f32 %v723_v15 }
 0x3af   : > { %771 = vadd.xlane.f32.xlu1 %v770_v10  ;;  %1279 = vmatprep.mubr.msk.f32.mxu1 %vm486_vm2, %v1397_v9  ;;  %v767_v16 = vsel %vm486_vm2, %v1397_v9, 0.0  ;;  %1404 = vpow2.f32 %v721_v17 }
 0x3b0   : > { %1280 = vmatmul.mubr.msk.f32.vlgmr.msra.gmra.mrb[2].mxu1 %vm486_vm2, %v1395_v8  ;;  %1406 = vpow2.f32 %v725_v18 }
 0x3b1   : > { %1408 = vpow2.f32 %v719_v22 }
 0x3b3   : > { %v1399_v11 = vpop.eup %1398 }
 0x3b4   : > { %1282 = vmatprep.mubr.msk.f32.mxu1 %vm486_vm2, %v1399_v11  ;;  %v773_v12 = vsel %vm486_vm2, %v1399_v11, 0.0 }
 0x3b5   : > { %774 = vadd.xlane.f32.xlu0 %v773_v12 }
 0x3b7   : > { %v1401_v13 = vpop.eup %1400 }
 0x3b8   : > { %1283 = vmatmul.mubr.msk.f32.gmra.mrb[4].mxu1 %vm486_vm2, %v1401_v13  ;;  %v776_v14 = vsel %vm486_vm2, %v1401_v13, 0.0  ;;  %v1403_v19 = vpop.eup %1402 }
 0x3b9   : > { %777 = vadd.xlane.f32.xlu1 %v776_v14  ;;  %v1405_v20 = vpop.eup %1404  ;;  %v765_v28 = vmul.f32 %v1403_v19, %v761_v27 }
 0x3ba   : > { %v1407_v21 = vpop.eup %1406  ;;  %v764_v24 = vmul.f32 %v1405_v20, %v760_v23 }
 0x3bb   : > { %v766_v32 = vmul.f32 %v1407_v21, %v762_v30  ;;  %v1409_v33 = vpop.eup %1408 }
 0x3bc   : > { %v763_v38 = vmul.f32 %v1409_v33, %v759_v36 }
 0x3bd   : > { %768 = vadd.xlane.f32.xlu1 %v767_v16 }
 0x3cb   : > { %804 = vperm.xlu0 %1392, %v1403_v19  }
 0x3ce   : > { %799 = vperm.xlu1 %1393, %v1405_v20  }
 0x3d2   : > { %809 = vperm.xlu1 %1393, %v1407_v21  }
 0x43c   : > { %v772_v25 = vpop.xlane.xlu1 %771 }
 0x43d   : > { %v780_v26 = vadd.f32 %v772_v25, %v764_v24 }
 0x43f   : > { %785 = vst.msk [vmem:[#allocation4 + $0x8] sm:$0xff] %vm491_vm3, %v780_v26 }
 0x442   : > { %v775_v29 = vpop.xlane.xlu0 %774 }
 0x443   : > { %v781_v31 = vadd.f32 %v775_v29, %v765_v28  ;;  %v1216_v28 = vld [vmem:[%s1991_s7] ss:$0 sm:$0xff] }
 0x445   : > { %786 = vst.msk [vmem:[#allocation4 + $0x10] sm:$0xff] %vm491_vm3, %v781_v31 }
 0x446   : > { %v778_v34 = vpop.xlane.xlu1 %777  ;;  %v936_v35 = vld [vmem:[#allocation4 + $0x8] sm:$0xff] }
 0x447   : > { %v782_v37 = vadd.f32 %v778_v34, %v766_v32  ;;  %946 = vperm.xlu1 %1393, %v936_v35  }
 0x449   : > { %787 = vst.msk [vmem:[#allocation4 + $0x18] sm:$0xff] %vm491_vm3, %v782_v37 }
 0x44a   : > { %v769_v39 = vpop.xlane.xlu1 %768  ;;  %v805_v53 = vpop.permute.xlu0 %804 }
 0x44b   : > { %v779_v40 = vadd.f32 %v769_v39, %v763_v38  ;;  %v814_v55 = vmul.f32 %v805_v53, %v790_v52 }
 0x44c   : > { %v937_v41 = vld [vmem:[#allocation4 + $0x10] sm:$0xff] }
 0x44d   : > { %784 = vst.msk [vmem:[#allocation4] sm:$0xff] %vm491_vm3, %v779_v40  ;;  %951 = vperm.xlu0 %1392, %v937_v41  }
 0x44e   : > { %v800_v45 = vpop.permute.xlu1 %799 }
 0x44f   : > { %v813_v46 = vmul.f32 %v800_v45, %v789_v44 }
 0x450   : > { %v938_v42 = vld [vmem:[#allocation4 + $0x18] sm:$0xff] }
 0x451   : > { %956 = vperm.xlu1 %1393, %v938_v42   ;;  %794 = vperm.xlu0 %1392, %v1409_v33  }
 0x452   : > { %v810_v51 = vpop.permute.xlu1 %809 }
 0x453   : > { %v815_v54 = vmul.f32 %v810_v51, %v791_v50 }
 0x454   : > { %v935_v43 = vld [vmem:[#allocation4] sm:$0xff] }
 0x455   : > { %941 = vperm.xlu1 %1393, %v935_v43  }
 0x483   : > { %v1281_v47 = vpop.f32.mrb[2].mxu1 }
 0x484   : > { %v917_v48 = vadd.f32 %v1281_v47, %v813_v46  ;;  %v897_v49 = vpop.f32.mrb[3].mxu1 }
 0x486   : > { %921 = vst.msk [vmem:[#allocation5 + $0x8] sm:$0xff] %vm486_vm2, %v917_v48 }
 0x48b   : > { %v1284_v56 = vpop.f32.mrb[4].mxu1 }
 0x48c   : > { %v919_v57 = vadd.f32 %v1284_v56, %v815_v54  ;;  %v907_v58 = vpop.f32.mrb[5].mxu1 }
 0x48d   : > { %v918_v59 = vadd.f32 %v907_v58, %v814_v55  ;;  %v932_v10 = vld [vmem:[#allocation5 + $0x8] sm:$0xff] }
 0x48e   : > { %923 = vst.msk [vmem:[#allocation5 + $0x18] sm:$0xff] %vm486_vm2, %v919_v57 }
 0x48f   : > { %922 = vst.msk [vmem:[#allocation5 + $0x10] sm:$0xff] %vm486_vm2, %v918_v59 }
 0x495   : > { %v934_v16 = vld [vmem:[#allocation5 + $0x18] sm:$0xff] }
 0x496   : > { %v933_v13 = vld [vmem:[#allocation5 + $0x10] sm:$0xff] }
 0x4c6   : > { %v947_v60 = vpop.permute.xlu1 %946 }
 0x4c7   : > { %1410 = vrcp.f32 %v947_v60 }
 0x4cc   : > { %v952_v1 = vpop.permute.xlu0 %951 }
 0x4cd   : > { %1412 = vrcp.f32 %v952_v1 }
 0x4d0   : > { %v957_v6 = vpop.permute.xlu1 %956  ;;  %v795_v7 = vpop.permute.xlu0 %794 }
 0x4d1   : > { %v1411_v8 = vpop.eup %1410  ;;  %1414 = vrcp.f32 %v957_v6  ;;  %v812_v9 = vmul.f32 %v795_v7, %v788_v5 }
 0x4d2   : > { %v962_v0 = vmul.f32 %v1411_v8, %v932_v10 }
 0x4d3   : > { %v916_v11 = vadd.f32 %v897_v49, %v812_v9 }
 0x4d4   : > { %968 = vrot.lane.b32.xlu0 %v962_v0, %s1576_s14  ;;  %v942_v18 = vpop.permute.xlu1 %941  ;;  %s1484_s14 = scalar_lea.vmem %s1483_s16, 256 }
 0x4d5   : > { %920 = vst.msk [vmem:[#allocation5] sm:$0xff] %vm486_vm2, %v916_v11  ;;  %1416 = vrcp.f32 %v942_v18  ;;  %p1486_p12 = scmp.lt.s32.totalorder %s1484_s14, %s1478_s21 }
 0x4d7   : > { %v1413_v12 = vpop.eup %1412  ;;  %p1487_p1 = por %p1486_p12, %p1485_p10 }
 0x4d8   : > { %v964_v14 = vmul.f32 %v1413_v12, %v933_v13 }
 0x4d9   : > { %p1488_p2 = pnand %p1487_p1, %p1481_p4 }
 0x4da   : > { %972 = vrot.lane.b32.xlu1 %v964_v14, %s1577_s11 }
 0x4db   : > { %v1415_v15 = vpop.eup %1414 }
 0x4dc   : > { %v966_v17 = vmul.f32 %v1415_v15, %v934_v16  ;;  %v931_v20 = vld [vmem:[#allocation5] sm:$0xff] }
 0x4de   : > { %976 = vrot.lane.b32.xlu0 %v966_v17, %s1578_s9 }
 0x4df   : > { %v1417_v19 = vpop.eup %1416 }
 0x4e0   : > { %v960_v22 = vmul.f32 %v1417_v19, %v931_v20 }
 0x546   : > { %v969_v21 = vpop.permute.xlu0 %968 }
 0x547   : > { %v979_v24 = vsel %vm486_vm2, %v960_v22, %v969_v21 }
 0x54c   : > { %v973_v23 = vpop.permute.xlu1 %972 }
 0x54d   : > { %v981_v25 = vsel %vm980_vm4, %v979_v24, %v973_v23 }
 0x550   : > { %v977_v26 = vpop.permute.xlu0 %976 }
 0x551   : > { %v983_v27 = vsel %vm982_vm5, %v981_v25, %v977_v26 }
 0x552   : > { %1294 = vmatmul.mubr.msk.f32.vlgmr.msra.gmra.mrb[6].mxu0 %vm401_vm1, %v983_v27 }
 0x625   : > { %v1064_v29 = vpop.f32.mrb[6].mxu0 }
 0x626   : > { %v1065_v30 = vadd.f32 %v1216_v28, %v1064_v29  ;;  %v1295_v31 = vpop.f32.mrb[7].mxu0 }
 0x628   : > { %1068 = vst.msk [vmem:[%s384_s23] sm:$0xff] %vm401_vm1, %v1065_v30 }
 0x629   : > { %1491 = shalt.err (!%p1488_p2)
}
 0x62a   : > { %s1492_s12 = scalar_lea.hbm %s1934_s15, 128  ;;  %s1496_s22 = scalar_lea.hbm %s1992_s8, 256 }
 0x62b   : > { %p1493_p9 = scmp.ne.s32.totalorder %s1934_s15, %s1492_s12  ;;  %p1497_p6 = scmp.lt.u32.totalorder %s1934_s15, %s1992_s8 }
 0x62c   : > { %p1498_p13 = scmp.lt.u32.totalorder %s1496_s22, %s1492_s12  ;;  %p1500_p0 = scmp.lt.u32.totalorder %s1492_s12, %s1934_s15 }
 0x62d   : > { %p1494_p11 = pnand %p1493_p9, %p2015_p5 }
 0x62e   : > { %p1499_p8 = por %p1498_p13, %p1497_p6 }
 0x62f   : > { %p1495_p3 = pneg %p1494_p11 }
 0x630   : > { %p1501_p7 = por %p1500_p0, %p1499_p8 }
 0x632   : > { %p1502_p4 = pnand %p1501_p7, %p1495_p3 }
 0x634   : > { %1505 = shalt.err (!%p1502_p4)
}
 0x635   : > { %1318 = dma.vmem_to_hbm [thread:$0]  (%p2015_p5), %s1936_s25, 128, %s1934_s15, %s1070_s24  }
 0x636 PF: > { %s1096_s23 = sand.u32 1, %s1544_s27   ;;  %p2016_p10 = scmp.ne.s32.totalorder %s2005_s20, 0 }
 0x637   : > { %p2017_p12 = scmp.ge.s32.totalorder %s1564_s10, 2  ;;  %s1097_s26 = scalar_lea.sflag [#allocation8], %s1096_s23 }
 0x639   : > { %p1328_p1 = pnand %p2017_p12, %p2016_p10 }
 0x63b   : > { %1539 = dma.done.wait (!%p1328_p1), %s1097_s26, 128  }
 0x63c   : > { %1541 = vsyncadd (!%p1328_p1), %s1097_s26, 4294967168  ;;  %s27_s10 = sadd.s32 1, %s1564_s10   ;;  %s2018_s30 = sld [smem:[#allocation15_spill]] }
 0x63d   : > { %p24_p2 = scmp.ge.s32.totalorder %s27_s10, 4   ;;  %s2019_s9 = sld [smem:[#allocation16_spill]] }
 0x63e   : > { %s2020_s27 = smov %s1548_s28  ;;  %s2021_s28 = smov %s1552_s29 }
 0x63f   : > { %s2022_s29 = smov %s1681_s19  ;;  %26 = sbr.rel (!%p24_p2) target bundleno = 10 (0xa), region = 118 }
 0x646   :  { %1102 = vsyncpa [#allocation7], 1 }
 0x647   :  { %1104 = vsyncpa [#allocation7 + $0x1], 1 }
 0x648   :  { %1105 = vsyncpa [#allocation10], 1 }
 0x649   :  { %1107 = vsyncpa [#allocation10 + $0x1], 1 }
 0x64a   :  { %1108 = vsyncpa [#allocation8], 1 }
 0x64b   :  { %1110 = vsyncpa [#allocation8 + $0x1], 1 }

</bundles_post_ra>
